<compile_context>
chip_gen: v6e
topology: v6e:2x2x1
jax: 0.10.0
libtpu: 0.0.40
codegen_flags: <defaults>
</compile_context>

<pallas_src>
import jax
import jax.numpy as jnp
from jax.experimental import pallas as pl
from jax.experimental.pallas import tpu as pltpu

LANE = 128
BF16_SUBLANE = 16          # bf16 packs 2 rows per sublane -> batch tiles % 16 == 0
NEG_INF = -1e30


def _round_up(n, m):
    return ((n + m - 1) // m) * m


def mlp_kernel(x_ref,
               w1_ref, b1_ref,
               w2_ref, b2_ref,
               w3_ref, b3_ref,
               w4_ref, b4_ref,
               w5_ref, b5_ref,
               o_ref):
    """One batch tile: 5 matmuls (bf16 operands, f32 accum) + log_softmax.

    The class mask is baked into the padded columns of b5 (-1e30), so the padded
    logit lanes contribute exp()=0 to the normalization with zero extra VPU work.
    """
    x = x_ref[...].astype(jnp.bfloat16)          # in-kernel cast; wrapper keeps x f32

    def linear_relu(h_bf16, w_ref, b_ref):
        z = jnp.dot(h_bf16, w_ref[...], preferred_element_type=jnp.float32)
        z = z + b_ref[...]                       # bias-add in f32
        return jnp.maximum(z, 0.0)               # ReLU in f32 (padded lanes stay 0)

    h = linear_relu(x, w1_ref, b1_ref)
    h = linear_relu(h.astype(jnp.bfloat16), w2_ref, b2_ref)
    h = linear_relu(h.astype(jnp.bfloat16), w3_ref, b3_ref)
    h = linear_relu(h.astype(jnp.bfloat16), w4_ref, b4_ref)

    logits = jnp.dot(h.astype(jnp.bfloat16), w5_ref[...],
                     preferred_element_type=jnp.float32) + b5_ref[...]

    # Numerically stable log_softmax over dim=1 (f32 math, bf16 store).
    m = jnp.max(logits, axis=1, keepdims=True)
    shifted = logits - m
    lse = jnp.log(jnp.sum(jnp.exp(shifted), axis=1, keepdims=True))
    o_ref[...] = (shifted - lse).astype(o_ref.dtype)


def _batch_tile_map(i):
    return (i, 0)


def _resident_map(i):
    return (0, 0)


def prepare_params(params):
    """One-time pad/cast of the 5 (w [in,out], b [1,out]) pairs.

    Weights -> bf16, zero-padded to lane multiples (layer-1 keeps its real input
    width so x needs no feature padding). Biases -> f32; the last bias' padded
    columns are set to -1e30 so padded logit columns are masked out of
    log_softmax for free.
    """
    n = len(params)
    prepped = []
    for i, (w, b) in enumerate(params):
        din, dout = w.shape
        din_p = din if i == 0 else _round_up(din, LANE)
        dout_p = _round_up(dout, LANE)
        w_p = jnp.zeros((din_p, dout_p), jnp.bfloat16).at[:din, :dout].set(
            w.astype(jnp.bfloat16))
        pad_fill = NEG_INF if i == n - 1 else 0.0
        b_p = jnp.full((1, dout_p), pad_fill, jnp.float32).at[:, :dout].set(
            b.reshape(1, -1).astype(jnp.float32))
        prepped.append((w_p, b_p))
    return prepped


def mlp_forward(x, prepped_params, out_dim, *, batch_tile=1024):
    """x: [B, F] float32; prepped_params from prepare_params().

    Returns [B, out_dim] bf16 log-probabilities.
    """
    B, F = x.shape
    out_pad = prepped_params[-1][1].shape[1]

    b16 = _round_up(B, BF16_SUBLANE)
    tb = min(_round_up(batch_tile, BF16_SUBLANE), b16)
    # v7x has 2 TensorCores: keep >= 2 grid steps when the batch allows it so
    # the "parallel" grid axis can actually shard across cores.
    if b16 >= 2 * BF16_SUBLANE and b16 <= tb:
        tb = _round_up((b16 + 1) // 2, BF16_SUBLANE)
    B_pad = _round_up(B, tb)

    # Only the batch axis is ever padded; no feature-dim pad, no wrapper cast.
    x_in = x if B_pad == B else jnp.zeros((B_pad, F), x.dtype).at[:B, :].set(x)

    flat_args = [x_in]
    in_specs = [pl.BlockSpec((tb, F), _batch_tile_map)]
    for w_p, b_p in prepped_params:
        flat_args += [w_p, b_p]
        in_specs.append(pl.BlockSpec(w_p.shape, _resident_map))
        in_specs.append(pl.BlockSpec(b_p.shape, _resident_map))

    out_spec = pl.BlockSpec((tb, out_pad), _batch_tile_map)

    out_padded = pl.pallas_call(
        mlp_kernel,
        out_shape=jax.ShapeDtypeStruct((B_pad, out_pad), jnp.bfloat16),
        grid_spec=pltpu.PrefetchScalarGridSpec(
            num_scalar_prefetch=0,
            grid=(B_pad // tb,),
            in_specs=in_specs,
            out_specs=out_spec,
        ),
        compiler_params=pltpu.CompilerParams(
            dimension_semantics=("parallel",),
            vmem_limit_bytes=48 * 1024 * 1024,
        ),
    )(*flat_args)

    # Final slice to the module's [B, out_dim] contract; a fused downstream
    # consumer (loss/argmax) could take the padded slab directly instead.
    return out_padded[:B, :out_dim]


def mlp_reference(x, params):
    """Pure-JAX reference with the same bf16-matmul / f32-accumulate recipe."""
    h = x
    n = len(params)
    for i, (w, b) in enumerate(params):
        z = jnp.dot(h.astype(jnp.bfloat16), w.astype(jnp.bfloat16),
                    preferred_element_type=jnp.float32) + b
        h = jnp.maximum(z, 0.0) if i < n - 1 else z
    return jax.nn.log_softmax(h, axis=1)


def init_params(key, dims):
    """Deterministic init. dims = [input, h, h, h, h, output].
    Weights stored as [in, out] (transpose of PyTorch's [out, in])."""
    params = []
    for i in range(len(dims) - 1):
        fan_in, fan_out = dims[i], dims[i + 1]
        key, kw, kb = jax.random.split(key, 3)
        bound = 1.0 / jnp.sqrt(fan_in)
        w = jax.random.uniform(kw, (fan_in, fan_out), jnp.float32, -bound, bound)
        b = jax.random.uniform(kb, (1, fan_out), jnp.float32, -bound, bound)
        params.append((w, b))
    return params


if __name__ == "__main__":
    # Small shapes consistent with the module: batch=8, input features=64,
    # hidden=100, output=10 (hidden/output match the reference module).
    B, INPUT, HIDDEN, OUTPUT = 8, 64, 100, 10

    key = jax.random.PRNGKey(0)
    key, kx = jax.random.split(key)
    x = jax.random.normal(kx, (B, INPUT), dtype=jnp.float32)

    params = init_params(key, [INPUT, HIDDEN, HIDDEN, HIDDEN, HIDDEN, OUTPUT])
    prepped = prepare_params(params)   # one-time pad/cast, hoisted out of forward

    out = mlp_forward(x, prepped, OUTPUT)
    out = jax.block_until_ready(out)

    assert out.shape == (B, OUTPUT)
    assert out.dtype == jnp.bfloat16

    out_f32 = out.astype(jnp.float32)

    # log_softmax rows exponentiate-sum to ~1 (bf16 output -> looser tolerance)
    row_sums = jnp.sum(jnp.exp(out_f32), axis=1)
    assert bool(jnp.all(jnp.abs(row_sums - 1.0) < 1e-2))

    # match a pure-JAX reference that uses the same bf16/f32 recipe
    ref = mlp_reference(x, params)
    assert bool(jnp.all(jnp.abs(out_f32 - ref) < 3e-2))

    print("KERNEL_OK")
</pallas_src>

<mosaic_0001>
module attributes {stable_mosaic.version = 11 : i64} {
  func.func @mlp_kernel(%arg0: i32, %arg1: memref<16x64xf32, #tpu.memory_space<vmem>>, %arg2: memref<64x128xbf16, #tpu.memory_space<vmem>>, %arg3: memref<1x128xf32, #tpu.memory_space<vmem>>, %arg4: memref<128x128xbf16, #tpu.memory_space<vmem>>, %arg5: memref<1x128xf32, #tpu.memory_space<vmem>>, %arg6: memref<128x128xbf16, #tpu.memory_space<vmem>>, %arg7: memref<1x128xf32, #tpu.memory_space<vmem>>, %arg8: memref<128x128xbf16, #tpu.memory_space<vmem>>, %arg9: memref<1x128xf32, #tpu.memory_space<vmem>>, %arg10: memref<128x128xbf16, #tpu.memory_space<vmem>>, %arg11: memref<1x128xf32, #tpu.memory_space<vmem>>, %arg12: memref<16x128xbf16, #tpu.memory_space<vmem>>) attributes {dimension_semantics = [#tpu.dimension_semantics<parallel>], iteration_bounds = array<i64: 1>, scalar_prefetch = 0 : i64, scratch_operands = 0 : i64, tpu.core_type = #tpu.core_type<tc>, window_params = [{transform_indices = @transform_0, window_bounds = array<i64: 16, 64>}, {pipeline_mode = #tpu.pipeline_mode<synchronous>, transform_indices = @transform_1, window_bounds = array<i64: 64, 128>}, {pipeline_mode = #tpu.pipeline_mode<synchronous>, transform_indices = @transform_2, window_bounds = array<i64: 1, 128>}, {pipeline_mode = #tpu.pipeline_mode<synchronous>, transform_indices = @transform_3, window_bounds = array<i64: 128, 128>}, {pipeline_mode = #tpu.pipeline_mode<synchronous>, transform_indices = @transform_4, window_bounds = array<i64: 1, 128>}, {pipeline_mode = #tpu.pipeline_mode<synchronous>, transform_indices = @transform_5, window_bounds = array<i64: 128, 128>}, {pipeline_mode = #tpu.pipeline_mode<synchronous>, transform_indices = @transform_6, window_bounds = array<i64: 1, 128>}, {pipeline_mode = #tpu.pipeline_mode<synchronous>, transform_indices = @transform_7, window_bounds = array<i64: 128, 128>}, {pipeline_mode = #tpu.pipeline_mode<synchronous>, transform_indices = @transform_8, window_bounds = array<i64: 1, 128>}, {pipeline_mode = #tpu.pipeline_mode<synchronous>, transform_indices = @transform_9, window_bounds = array<i64: 128, 128>}, {pipeline_mode = #tpu.pipeline_mode<synchronous>, transform_indices = @transform_10, window_bounds = array<i64: 1, 128>}, {transform_indices = @transform_11, window_bounds = array<i64: 16, 128>}]} {
    %c0 = arith.constant 0 : index
    %c0_0 = arith.constant 0 : index
    %0 = vector.load %arg1[%c0, %c0_0] : memref<16x64xf32, #tpu.memory_space<vmem>>, vector<16x64xf32>
    %1 = arith.truncf %0 : vector<16x64xf32> to vector<16x64xbf16>
    %c0_1 = arith.constant 0 : index
    %c0_2 = arith.constant 0 : index
    %2 = vector.load %arg2[%c0_1, %c0_2] : memref<64x128xbf16, #tpu.memory_space<vmem>>, vector<64x128xbf16>
    %cst = arith.constant dense<0.000000e+00> : vector<16x128xf32>
    %3 = tpu.matmul %1, %2, %cst {dimension_numbers = #tpu.dot_dimension_numbers<[1], [0], [0], [1], [0, 0, 1, 1], [], []>} : vector<16x64xbf16>, vector<64x128xbf16>, vector<16x128xf32> -> vector<16x128xf32>
    %c0_3 = arith.constant 0 : index
    %c0_4 = arith.constant 0 : index
    %4 = vector.load %arg3[%c0_3, %c0_4] : memref<1x128xf32, #tpu.memory_space<vmem>>, vector<1x128xf32>
    %5 = vector.broadcast %4 : vector<1x128xf32> to vector<16x128xf32>
    %6 = arith.addf %3, %5 : vector<16x128xf32>
    %cst_5 = arith.constant 0.000000e+00 : f32
    %7 = vector.broadcast %cst_5 : f32 to vector<16x128xf32>
    %8 = arith.maximumf %6, %7 : vector<16x128xf32>
    %9 = arith.truncf %8 : vector<16x128xf32> to vector<16x128xbf16>
    %c0_6 = arith.constant 0 : index
    %c0_7 = arith.constant 0 : index
    %10 = vector.load %arg4[%c0_6, %c0_7] : memref<128x128xbf16, #tpu.memory_space<vmem>>, vector<128x128xbf16>
    %cst_8 = arith.constant dense<0.000000e+00> : vector<16x128xf32>
    %11 = tpu.matmul %9, %10, %cst_8 {dimension_numbers = #tpu.dot_dimension_numbers<[1], [0], [0], [1], [0, 0, 1, 1], [], []>} : vector<16x128xbf16>, vector<128x128xbf16>, vector<16x128xf32> -> vector<16x128xf32>
    %c0_9 = arith.constant 0 : index
    %c0_10 = arith.constant 0 : index
    %12 = vector.load %arg5[%c0_9, %c0_10] : memref<1x128xf32, #tpu.memory_space<vmem>>, vector<1x128xf32>
    %13 = vector.broadcast %12 : vector<1x128xf32> to vector<16x128xf32>
    %14 = arith.addf %11, %13 : vector<16x128xf32>
    %cst_11 = arith.constant 0.000000e+00 : f32
    %15 = vector.broadcast %cst_11 : f32 to vector<16x128xf32>
    %16 = arith.maximumf %14, %15 : vector<16x128xf32>
    %17 = arith.truncf %16 : vector<16x128xf32> to vector<16x128xbf16>
    %c0_12 = arith.constant 0 : index
    %c0_13 = arith.constant 0 : index
    %18 = vector.load %arg6[%c0_12, %c0_13] : memref<128x128xbf16, #tpu.memory_space<vmem>>, vector<128x128xbf16>
    %cst_14 = arith.constant dense<0.000000e+00> : vector<16x128xf32>
    %19 = tpu.matmul %17, %18, %cst_14 {dimension_numbers = #tpu.dot_dimension_numbers<[1], [0], [0], [1], [0, 0, 1, 1], [], []>} : vector<16x128xbf16>, vector<128x128xbf16>, vector<16x128xf32> -> vector<16x128xf32>
    %c0_15 = arith.constant 0 : index
    %c0_16 = arith.constant 0 : index
    %20 = vector.load %arg7[%c0_15, %c0_16] : memref<1x128xf32, #tpu.memory_space<vmem>>, vector<1x128xf32>
    %21 = vector.broadcast %20 : vector<1x128xf32> to vector<16x128xf32>
    %22 = arith.addf %19, %21 : vector<16x128xf32>
    %cst_17 = arith.constant 0.000000e+00 : f32
    %23 = vector.broadcast %cst_17 : f32 to vector<16x128xf32>
    %24 = arith.maximumf %22, %23 : vector<16x128xf32>
    %25 = arith.truncf %24 : vector<16x128xf32> to vector<16x128xbf16>
    %c0_18 = arith.constant 0 : index
    %c0_19 = arith.constant 0 : index
    %26 = vector.load %arg8[%c0_18, %c0_19] : memref<128x128xbf16, #tpu.memory_space<vmem>>, vector<128x128xbf16>
    %cst_20 = arith.constant dense<0.000000e+00> : vector<16x128xf32>
    %27 = tpu.matmul %25, %26, %cst_20 {dimension_numbers = #tpu.dot_dimension_numbers<[1], [0], [0], [1], [0, 0, 1, 1], [], []>} : vector<16x128xbf16>, vector<128x128xbf16>, vector<16x128xf32> -> vector<16x128xf32>
    %c0_21 = arith.constant 0 : index
    %c0_22 = arith.constant 0 : index
    %28 = vector.load %arg9[%c0_21, %c0_22] : memref<1x128xf32, #tpu.memory_space<vmem>>, vector<1x128xf32>
    %29 = vector.broadcast %28 : vector<1x128xf32> to vector<16x128xf32>
    %30 = arith.addf %27, %29 : vector<16x128xf32>
    %cst_23 = arith.constant 0.000000e+00 : f32
    %31 = vector.broadcast %cst_23 : f32 to vector<16x128xf32>
    %32 = arith.maximumf %30, %31 : vector<16x128xf32>
    %33 = arith.truncf %32 : vector<16x128xf32> to vector<16x128xbf16>
    %c0_24 = arith.constant 0 : index
    %c0_25 = arith.constant 0 : index
    %34 = vector.load %arg10[%c0_24, %c0_25] : memref<128x128xbf16, #tpu.memory_space<vmem>>, vector<128x128xbf16>
    %cst_26 = arith.constant dense<0.000000e+00> : vector<16x128xf32>
    %35 = tpu.matmul %33, %34, %cst_26 {dimension_numbers = #tpu.dot_dimension_numbers<[1], [0], [0], [1], [0, 0, 1, 1], [], []>} : vector<16x128xbf16>, vector<128x128xbf16>, vector<16x128xf32> -> vector<16x128xf32>
    %c0_27 = arith.constant 0 : index
    %c0_28 = arith.constant 0 : index
    %36 = vector.load %arg11[%c0_27, %c0_28] : memref<1x128xf32, #tpu.memory_space<vmem>>, vector<1x128xf32>
    %37 = vector.broadcast %36 : vector<1x128xf32> to vector<16x128xf32>
    %38 = arith.addf %35, %37 : vector<16x128xf32>
    %cst_29 = arith.constant dense<0xFF800000> : vector<16xf32>
    %39 = vector.multi_reduction <maximumf>, %38, %cst_29 [1] : vector<16x128xf32> to vector<16xf32>
    %40 = vector.shape_cast %39 : vector<16xf32> to vector<16x1xf32>
    %41 = vector.broadcast %40 : vector<16x1xf32> to vector<16x128xf32>
    %42 = arith.subf %38, %41 : vector<16x128xf32>
    %43 = math.exp %42 : vector<16x128xf32>
    %cst_30 = arith.constant dense<0.000000e+00> : vector<16xf32>
    %44 = vector.multi_reduction <add>, %43, %cst_30 [1] : vector<16x128xf32> to vector<16xf32>
    %45 = vector.shape_cast %44 : vector<16xf32> to vector<16x1xf32>
    %46 = math.log %45 : vector<16x1xf32>
    %47 = vector.broadcast %46 : vector<16x1xf32> to vector<16x128xf32>
    %48 = arith.subf %42, %47 : vector<16x128xf32>
    %49 = arith.truncf %48 : vector<16x128xf32> to vector<16x128xbf16>
    %c0_31 = arith.constant 0 : index
    %c0_32 = arith.constant 0 : index
    %50 = vector.load %arg12[%c0_31, %c0_32] : memref<16x128xbf16, #tpu.memory_space<vmem>>, vector<16x128xbf16>
    tpu.vector_store %arg12[%c0_31, %c0_32], %49 {strides = array<i32>} : memref<16x128xbf16, #tpu.memory_space<vmem>>, vector<16x128xbf16>,
    return
  }
  func.func @transform_0(%arg0: i32) -> (i32, i32) {
    %c0_i32 = arith.constant 0 : i32
    %c0_i32_0 = arith.constant 0 : i32
    return %arg0, %c0_i32 : i32, i32
  }
  func.func @transform_1(%arg0: i32) -> (i32, i32) {
    %c0_i32 = arith.constant 0 : i32
    %c0_i32_0 = arith.constant 0 : i32
    %c0_i32_1 = arith.constant 0 : i32
    return %c0_i32, %c0_i32_0 : i32, i32
  }
  func.func @transform_2(%arg0: i32) -> (i32, i32) {
    %c0_i32 = arith.constant 0 : i32
    %c0_i32_0 = arith.constant 0 : i32
    %c0_i32_1 = arith.constant 0 : i32
    return %c0_i32, %c0_i32_0 : i32, i32
  }
  func.func @transform_3(%arg0: i32) -> (i32, i32) {
    %c0_i32 = arith.constant 0 : i32
    %c0_i32_0 = arith.constant 0 : i32
    %c0_i32_1 = arith.constant 0 : i32
    return %c0_i32, %c0_i32_0 : i32, i32
  }
  func.func @transform_4(%arg0: i32) -> (i32, i32) {
    %c0_i32 = arith.constant 0 : i32
    %c0_i32_0 = arith.constant 0 : i32
    %c0_i32_1 = arith.constant 0 : i32
    return %c0_i32, %c0_i32_0 : i32, i32
  }
  func.func @transform_5(%arg0: i32) -> (i32, i32) {
    %c0_i32 = arith.constant 0 : i32
    %c0_i32_0 = arith.constant 0 : i32
    %c0_i32_1 = arith.constant 0 : i32
    return %c0_i32, %c0_i32_0 : i32, i32
  }
  func.func @transform_6(%arg0: i32) -> (i32, i32) {
    %c0_i32 = arith.constant 0 : i32
    %c0_i32_0 = arith.constant 0 : i32
    %c0_i32_1 = arith.constant 0 : i32
    return %c0_i32, %c0_i32_0 : i32, i32
  }
  func.func @transform_7(%arg0: i32) -> (i32, i32) {
    %c0_i32 = arith.constant 0 : i32
    %c0_i32_0 = arith.constant 0 : i32
    %c0_i32_1 = arith.constant 0 : i32
    return %c0_i32, %c0_i32_0 : i32, i32
  }
  func.func @transform_8(%arg0: i32) -> (i32, i32) {
    %c0_i32 = arith.constant 0 : i32
    %c0_i32_0 = arith.constant 0 : i32
    %c0_i32_1 = arith.constant 0 : i32
    return %c0_i32, %c0_i32_0 : i32, i32
  }
  func.func @transform_9(%arg0: i32) -> (i32, i32) {
    %c0_i32 = arith.constant 0 : i32
    %c0_i32_0 = arith.constant 0 : i32
    %c0_i32_1 = arith.constant 0 : i32
    return %c0_i32, %c0_i32_0 : i32, i32
  }
  func.func @transform_10(%arg0: i32) -> (i32, i32) {
    %c0_i32 = arith.constant 0 : i32
    %c0_i32_0 = arith.constant 0 : i32
    %c0_i32_1 = arith.constant 0 : i32
    return %c0_i32, %c0_i32_0 : i32, i32
  }
  func.func @transform_11(%arg0: i32) -> (i32, i32) {
    %c0_i32 = arith.constant 0 : i32
    %c0_i32_0 = arith.constant 0 : i32
    return %arg0, %c0_i32 : i32, i32
  }
}

</mosaic_0001>

<bundles_post_ra>
// kernel: tpu_custom_call.1
= control target key start
LH: loop header
LB: loop body
LE: loop exit
PB: predicated region body
PF: predicated region fallthrough
CT: control target
= control target key end

     0   :  { %16 = vsyncpa [#allocation3], 0  ;;  %s1283_s0 = inlined_call_operand.hbm [shape: f32[16,64], index: 0, kind: input, shape index: {}]   ;;  %s1284_s1 = inlined_call_operand.hbm [shape: bf16[64,128], index: 1, kind: input, shape index: {}]   ;;  %s1285_s2 = inlined_call_operand.vmem [shape: f32[1,128], index: 2, kind: input, shape index: {}]   ;;  %s1286_s3 = inlined_call_operand.hbm [shape: bf16[128,128], index: 3, kind: input, shape index: {}]   ;;  %s1287_s4 = inlined_call_operand.vmem [shape: f32[1,128], index: 4, kind: input, shape index: {}]   ;;  %s1288_s5 = inlined_call_operand.hbm [shape: bf16[128,128], index: 5, kind: input, shape index: {}]   ;;  %s1289_s6 = inlined_call_operand.vmem [shape: f32[1,128], index: 6, kind: input, shape index: {}]   ;;  %s1290_s7 = inlined_call_operand.hbm [shape: bf16[128,128], index: 7, kind: input, shape index: {}]   ;;  %s1291_s8 = inlined_call_operand.vmem [shape: f32[1,128], index: 8, kind: input, shape index: {}]   ;;  %s1292_s9 = inlined_call_operand.hbm [shape: bf16[128,128], index: 9, kind: input, shape index: {}]   ;;  %s1293_s10 = inlined_call_operand.vmem [shape: f32[1,128], index: 10, kind: input, shape index: {}]   ;;  %s1294_s11 = inlined_call_operand.hbm [shape: bf16[16,128], index: 11, kind: output, shape index: {}]  }
   0x1   :  { %17 = vsyncpa [#allocation6], 0 }
   0x2   :  { %18 = vsyncpa [#allocation9], 0 }
   0x3   :  { %19 = vsyncpa [#allocation12], 0 }
   0x4   :  { %20 = vsyncpa [#allocation4], 0  ;;  %s1110_s17 = smov [#allocation5]  }
   0x5   :  { %s38_s18 = sshll.u32 %s1110_s17, 4  ;;  %s39_s18 = int_to_ptr.vmem [resolvable:$true] %s38_s18 }
   0x6   :  { %s968_s19 = scalar_lea.vmem %s39_s18, 512  ;;  %p973_p1 = scmp.lt.s32.totalorder %s39_s18, %s39_s18 }
   0x7   :  { %p969_p0 = scmp.ne.s32.totalorder %s39_s18, %s968_s19  ;;  %p974_p2 = scmp.lt.s32.totalorder %s968_s19, %s968_s19 }
   0x9   :  { %p975_p3 = por %p974_p2, %p973_p1 }
   0xb   :  { %p976_p4 = pnand %p975_p3, %p969_p0 }
   0xd   :  { %979 = shalt.err (!%p976_p4)
}
   0xe   :  { %s1111_s20 = smov 64   ;;  %s1112_s21 = smov 4  }
   0xf   :  { %44 = dma.hbm_to_vmem [thread:$0]  %s1284_s1, 512, %s39_s18, [#allocation6], %s1111_s20, %s1111_s20, %s1112_s21  }
  0x10   :  { %s1113_s24 = smov [#allocation8]   ;;  %s1114_s26 = smov [#allocation2]  }
  0x11   :  { %s66_s25 = sshll.u32 %s1113_s24, 4  ;;  %s26_s27 = sshll.u32 %s1114_s26, 4  ;;  %s67_s25 = int_to_ptr.vmem [resolvable:$true] %s66_s25  ;;  %s27_s27 = int_to_ptr.vmem [resolvable:$true] %s26_s27 }
  0x12   :  { %s988_s28 = scalar_lea.vmem %s67_s25, 1024  ;;  %p993_p6 = scmp.lt.s32.totalorder %s67_s25, %s67_s25 }
  0x13   :  { %p989_p5 = scmp.ne.s32.totalorder %s67_s25, %s988_s28  ;;  %p994_p7 = scmp.lt.s32.totalorder %s988_s28, %s988_s28 }
  0x15   :  { %p995_p8 = por %p994_p7, %p993_p6 }
  0x17   :  { %p996_p9 = pnand %p995_p8, %p989_p5 }
  0x19   :  { %999 = shalt.err (!%p996_p9)
}
  0x1a   :  { %72 = dma.hbm_to_vmem [thread:$0]  %s1288_s5, 1024, %s67_s25, [#allocation9], %s1111_s20, %s1111_s20, %s1112_s21  }
  0x1b   :  { %s1008_s1 = scalar_lea.vmem %s27_s27, 256  ;;  %p1013_p11 = scmp.lt.s32.totalorder %s27_s27, %s27_s27 }
  0x1c   :  { %p1009_p10 = scmp.ne.s32.totalorder %s27_s27, %s1008_s1  ;;  %p1014_p12 = scmp.lt.s32.totalorder %s1008_s1, %s1008_s1 }
  0x1e   :  { %p1015_p13 = por %p1014_p12, %p1013_p11 }
  0x20   :  { %p1016_p0 = pnand %p1015_p13, %p1009_p10 }
  0x22   :  { %1019 = shalt.err (!%p1016_p0)
}
  0x23   :  { %s1115_s12 = smov 128   ;;  %s1116_s13 = smov 8  }
  0x24   :  { %32 = dma.hbm_to_vmem [thread:$0]  %s1283_s0, 256, %s27_s27, [#allocation3], %s1115_s12, %s1115_s12, %s1116_s13  }
  0x25   :  { %s1117_s16 = smov [#allocation7]   ;;  %s1118_s18 = smov [#allocation10]  }
  0x26   :  { %s52_s17 = sshll.u32 %s1117_s16, 4  ;;  %s80_s19 = sshll.u32 %s1118_s18, 4  ;;  %s53_s17 = int_to_ptr.vmem [resolvable:$true] %s52_s17  ;;  %s81_s19 = int_to_ptr.vmem [resolvable:$true] %s80_s19 }
  0x27   :  { %s1028_s5 = scalar_lea.vmem %s53_s17, 1024  ;;  %p1033_p2 = scmp.lt.s32.totalorder %s53_s17, %s53_s17 }
  0x28   :  { %p1029_p1 = scmp.ne.s32.totalorder %s53_s17, %s1028_s5  ;;  %p1034_p3 = scmp.lt.s32.totalorder %s1028_s5, %s1028_s5 }
  0x2a   :  { %p1035_p4 = por %p1034_p3, %p1033_p2 }
  0x2c   :  { %p1036_p5 = pnand %p1035_p4, %p1029_p1 }
  0x2e   :  { %1039 = shalt.err (!%p1036_p5)
}
  0x2f   :  { %58 = dma.hbm_to_vmem [thread:$0]  %s1286_s3, 1024, %s53_s17, [#allocation6], %s1111_s20, %s1111_s20, %s1112_s21  }
  0x30   :  { %s1048_s0 = scalar_lea.vmem %s81_s19, 1024  ;;  %p1053_p7 = scmp.lt.s32.totalorder %s81_s19, %s81_s19 }
  0x31   :  { %p1049_p6 = scmp.ne.s32.totalorder %s81_s19, %s1048_s0  ;;  %p1054_p8 = scmp.lt.s32.totalorder %s1048_s0, %s1048_s0 }
  0x33   :  { %p1055_p9 = por %p1054_p8, %p1053_p7 }
  0x35   :  { %p1056_p10 = pnand %p1055_p9, %p1049_p6 }
  0x37   :  { %1059 = shalt.err (!%p1056_p10)
}
  0x38   :  { %86 = dma.hbm_to_vmem [thread:$0]  %s1290_s7, 1024, %s81_s19, [#allocation9], %s1111_s20, %s1111_s20, %s1112_s21  }
  0x39   :  { %s1119_s26 = smov [#allocation11]  }
  0x3a   :  { %s94_s27 = sshll.u32 %s1119_s26, 4  ;;  %s95_s27 = int_to_ptr.vmem [resolvable:$true] %s94_s27 }
  0x3b   :  { %s1068_s28 = scalar_lea.vmem %s95_s27, 1024  ;;  %p1073_p12 = scmp.lt.s32.totalorder %s95_s27, %s95_s27 }
  0x3c   :  { %p1069_p11 = scmp.ne.s32.totalorder %s95_s27, %s1068_s28  ;;  %p1074_p13 = scmp.lt.s32.totalorder %s1068_s28, %s1068_s28 }
  0x3e   :  { %p1075_p0 = por %p1074_p13, %p1073_p12 }
  0x40   :  { %p1076_p1 = pnand %p1075_p0, %p1069_p11 }
  0x42   :  { %1079 = shalt.err (!%p1076_p1)
}
  0x43   :  { %100 = dma.hbm_to_vmem [thread:$0]  %s1292_s9, 1024, %s95_s27, [#allocation12], %s1111_s20, %s1111_s20, %s1112_s21  }
  0x44   :  { %1100 = dma.done.wait [#allocation3], 256  }
  0x45   :  { %1101 = vsyncadd [#allocation3], 4294967040 }
  0x46   :  { %1102 = dma.done.wait [#allocation6], 1536  }
  0x47   :  { %1103 = vsyncadd [#allocation6], 4294965760 }
  0x48   :  { %1104 = dma.done.wait [#allocation9], 2048  }
  0x49   :  { %1105 = vsyncadd [#allocation9], 4294965248 }
  0x4a   :  { %1106 = dma.done.wait [#allocation12], 1024  }
  0x4b   :  { %1107 = vsyncadd [#allocation12], 4294966272  ;;  %v1120_v0 = vmov 0.0   ;;  %vm1121_vm0 = vmmov 0   ;;  %v916_v1 = vld [vmem:[#allocation5 + $0x18] sm:$0xff]   ;;  %v917_v2 = vld [vmem:[#allocation5 + $0x10] sm:$0xff]  }
  0x4c   :  { %811 = vmatprep.subr.bf16.mxu0 %v1120_v0  ;;  %819 = vmatprep.mubr.msk.bf16.mxu0 %vm1121_vm0, %v1120_v0  ;;  %v920_v3 = vld [vmem:[#allocation7 + $0x38] sm:$0xff]   ;;  %v918_v4 = vld [vmem:[#allocation5 + $0x8] sm:$0xff]   ;;  %v921_v5 = vld [vmem:[#allocation7 + $0x30] sm:$0xff]   ;;  %vm164_vm1 = vcmask 523264  }
  0x4d   :  { %823 = vmatprep.subr.bf16.mxu1 %v1120_v0  ;;  %839 = vmatprep.mubr.msk.bf16.mxu1 %vm1121_vm0, %v1120_v0  ;;  %v919_v6 = vld [vmem:[#allocation5] sm:$0xff]   ;;  %v122_v7 = vld [vmem:[#allocation2] sm:$0xff]  ;;  %v123_v8 = vld [vmem:[#allocation2 + $0x8] sm:$0xff] }
  0x4e   :  { %812 = vmatpush3.bf16.msra.mxu0 %v916_v1  ;;  %824 = vmatpush3.bf16.msra.mxu1 %v920_v3  ;;  %v922_v9 = vld [vmem:[#allocation7 + $0x28] sm:$0xff]   ;;  %v124_v10 = vpack.c.bf16 %v123_v8, %v122_v7  ;;  %v923_v11 = vld [vmem:[#allocation7 + $0x20] sm:$0xff]   ;;  %v924_v12 = vld [vmem:[#allocation7 + $0x18] sm:$0xff]  }
  0x4f   :  { %813 = vmatprep.subr.bf16.mxu0 %v1120_v0  ;;  %825 = vmatprep.subr.bf16.mxu1 %v1120_v0  ;;  %v925_v13 = vld [vmem:[#allocation7 + $0x10] sm:$0xff]   ;;  %v926_v14 = vld [vmem:[#allocation7 + $0x8] sm:$0xff]   ;;  %v927_v15 = vld [vmem:[#allocation7] sm:$0xff]  }
  0x50   :  { %v928_v16 = vld [vmem:[#allocation8 + $0x38] sm:$0xff]   ;;  %v929_v17 = vld [vmem:[#allocation8 + $0x30] sm:$0xff]   ;;  %v930_v18 = vld [vmem:[#allocation8 + $0x28] sm:$0xff]  }
  0x51   :  { %v931_v19 = vld [vmem:[#allocation8 + $0x20] sm:$0xff]   ;;  %v932_v20 = vld [vmem:[#allocation8 + $0x18] sm:$0xff]   ;;  %v719_v21 = vld [vmem:[%s1285_s2] ss:$0 sm:$0xff] }
  0x52   :  { %814 = vmatpush3.bf16.msra.mxu0 %v917_v2  ;;  %826 = vmatpush3.bf16.msra.mxu1 %v921_v5  ;;  %v933_v31 = vld [vmem:[#allocation8 + $0x10] sm:$0xff]   ;;  %v934_v32 = vld [vmem:[#allocation8 + $0x8] sm:$0xff]   ;;  %v935_v33 = vld [vmem:[#allocation8] sm:$0xff]  }
  0x53   :  { %815 = vmatprep.subr.bf16.mxu0 %v1120_v0  ;;  %827 = vmatprep.subr.bf16.mxu1 %v1120_v0  ;;  %v936_v34 = vld [vmem:[#allocation10 + $0x38] sm:$0xff]   ;;  %v937_v35 = vld [vmem:[#allocation10 + $0x30] sm:$0xff]   ;;  %v938_v36 = vld [vmem:[#allocation10 + $0x28] sm:$0xff]  }
  0x54   :  { %v939_v37 = vld [vmem:[#allocation10 + $0x20] sm:$0xff]   ;;  %v940_v38 = vld [vmem:[#allocation10 + $0x18] sm:$0xff]   ;;  %v725_v39 = vld [vmem:[%s1287_s4] ss:$0 sm:$0xff] }
  0x55   :  { %v941_v49 = vld [vmem:[#allocation10 + $0x10] sm:$0xff]   ;;  %v942_v50 = vld [vmem:[#allocation10 + $0x8] sm:$0xff]   ;;  %v943_v51 = vld [vmem:[#allocation10] sm:$0xff]  }
  0x56   :  { %816 = vmatpush3.bf16.msra.mxu0 %v918_v4  ;;  %828 = vmatpush3.bf16.msra.mxu1 %v922_v9  ;;  %v944_v52 = vld [vmem:[#allocation11 + $0x38] sm:$0xff]   ;;  %v945_v53 = vld [vmem:[#allocation11 + $0x30] sm:$0xff]   ;;  %v946_v54 = vld [vmem:[#allocation11 + $0x28] sm:$0xff]  }
  0x57   :  { %817 = vmatprep.subr.bf16.mxu0 %v1120_v0  ;;  %829 = vmatprep.subr.bf16.mxu1 %v1120_v0  ;;  %v947_v55 = vld [vmem:[#allocation11 + $0x20] sm:$0xff]   ;;  %v948_v56 = vld [vmem:[#allocation11 + $0x18] sm:$0xff]   ;;  %v734_v57 = vld [vmem:[%s1289_s6] ss:$0 sm:$0xff] }
  0x58   :  { %v949_v4 = vld [vmem:[#allocation11 + $0x10] sm:$0xff]   ;;  %v950_v5 = vld [vmem:[#allocation11 + $0x8] sm:$0xff]  }
  0x59   :  { %v743_v7 = vld [vmem:[%s1291_s8] ss:$0 sm:$0xff]  ;;  %s1122_s8 = smov [#allocation13]  }
  0x5a   :  { %818 = vmatpush3.bf16.msra.mxu0 %v919_v6  ;;  %830 = vmatpush3.bf16.msra.mxu1 %v923_v11  ;;  %v951_v6 = vld [vmem:[#allocation11] sm:$0xff]  }
  0x5b   :  { %843 = vmatprep.subr.bf16.mxu0 %v1120_v0  ;;  %831 = vmatprep.subr.bf16.mxu1 %v1120_v0 }
  0x5d   :  { %820 = vmatmul.mubr.msk.bf16.vlgmr.msra.gmra.mxu0 %vm164_vm1, %v124_v10 }
  0x5e   :  { %859 = vmatprep.mubr.msk.bf16.mxu0 %vm1121_vm0, %v1120_v0  ;;  %832 = vmatpush3.bf16.msra.mxu1 %v924_v12 }
  0x5f   :  { %833 = vmatprep.subr.bf16.mxu1 %v1120_v0  ;;  %844 = vmatpush3.bf16.msra.mxu0 %v928_v16 }
  0x60   :  { %845 = vmatprep.subr.bf16.mxu0 %v1120_v0 }
  0x62   :  { %834 = vmatpush3.bf16.msra.mxu1 %v925_v13 }
  0x63   :  { %835 = vmatprep.subr.bf16.mxu1 %v1120_v0  ;;  %846 = vmatpush3.bf16.msra.mxu0 %v929_v17 }
  0x64   :  { %847 = vmatprep.subr.bf16.mxu0 %v1120_v0 }
  0x66   :  { %836 = vmatpush3.bf16.msra.mxu1 %v926_v14 }
  0x67   :  { %837 = vmatprep.subr.bf16.mxu1 %v1120_v0  ;;  %848 = vmatpush3.bf16.msra.mxu0 %v930_v18 }
  0x68   :  { %849 = vmatprep.subr.bf16.mxu0 %v1120_v0 }
  0x6a   :  { %838 = vmatpush3.bf16.msra.mxu1 %v927_v15 }
  0x6b   :  { %863 = vmatprep.subr.bf16.mxu1 %v1120_v0  ;;  %850 = vmatpush3.bf16.msra.mxu0 %v931_v19 }
  0x6c   :  { %851 = vmatprep.subr.bf16.mxu0 %v1120_v0 }
  0x6f   :  { %852 = vmatpush3.bf16.msra.mxu0 %v932_v20 }
  0x70   :  { %853 = vmatprep.subr.bf16.mxu0 %v1120_v0 }
  0x73   :  { %854 = vmatpush3.bf16.msra.mxu0 %v933_v31 }
  0x74   :  { %855 = vmatprep.subr.bf16.mxu0 %v1120_v0 }
  0x77   :  { %856 = vmatpush3.bf16.msra.mxu0 %v934_v32 }
  0x78   :  { %857 = vmatprep.subr.bf16.mxu0 %v1120_v0 }
  0x7b   :  { %858 = vmatpush3.bf16.msra.mxu0 %v935_v33 }
  0x7c   :  { %883 = vmatprep.subr.bf16.mxu0 %v1120_v0 }
 0x11d   :  { %v202_v22 = vpop.f32.mrf.mxu0 }
 0x11e   :  { %v203_v24 = vadd.f32 %v719_v21, %v202_v22 }
 0x11f   :  { %v821_v23 = vpop.f32.mrf.mxu0 }
 0x120   :  { %v209_v28 = vmax.f32 %v203_v24, 0.0 }
 0x121   :  { %v205_v25 = vpop.f32.mrf.mxu0 }
 0x122   :  { %v206_v26 = vadd.f32 %v719_v21, %v205_v25 }
 0x123   :  { %v822_v27 = vpop.f32.mrf.mxu0 }
 0x124   :  { %v210_v29 = vmax.f32 %v206_v26, 0.0 }
 0x126   :  { %v211_v30 = vpack.c.bf16 %v210_v29, %v209_v28 }
 0x128   :  { %840 = vmatmul.mubr.bf16.vlgmr.msra.gmra.mxu1 %v211_v30 }
 0x129   :  { %879 = vmatprep.mubr.msk.bf16.mxu1 %vm1121_vm0, %v1120_v0  ;;  %864 = vmatpush3.bf16.msra.mxu1 %v936_v34 }
 0x12a   :  { %865 = vmatprep.subr.bf16.mxu1 %v1120_v0 }
 0x12d   :  { %866 = vmatpush3.bf16.msra.mxu1 %v937_v35 }
 0x12e   :  { %867 = vmatprep.subr.bf16.mxu1 %v1120_v0 }
 0x131   :  { %868 = vmatpush3.bf16.msra.mxu1 %v938_v36 }
 0x132   :  { %869 = vmatprep.subr.bf16.mxu1 %v1120_v0 }
 0x135   :  { %870 = vmatpush3.bf16.msra.mxu1 %v939_v37 }
 0x136   :  { %871 = vmatprep.subr.bf16.mxu1 %v1120_v0 }
 0x139   :  { %872 = vmatpush3.bf16.msra.mxu1 %v940_v38 }
 0x13a   :  { %873 = vmatprep.subr.bf16.mxu1 %v1120_v0 }
 0x13d   :  { %874 = vmatpush3.bf16.msra.mxu1 %v941_v49 }
 0x13e   :  { %875 = vmatprep.subr.bf16.mxu1 %v1120_v0 }
 0x141   :  { %876 = vmatpush3.bf16.msra.mxu1 %v942_v50 }
 0x142   :  { %877 = vmatprep.subr.bf16.mxu1 %v1120_v0 }
 0x145   :  { %878 = vmatpush3.bf16.msra.mxu1 %v943_v51 }
 0x1e8   :  { %v317_v40 = vpop.f32.mrf.mxu1 }
 0x1e9   :  { %v318_v42 = vadd.f32 %v725_v39, %v317_v40 }
 0x1ea   :  { %v841_v41 = vpop.f32.mrf.mxu1 }
 0x1eb   :  { %v324_v46 = vmax.f32 %v318_v42, 0.0 }
 0x1ec   :  { %v320_v43 = vpop.f32.mrf.mxu1 }
 0x1ed   :  { %v321_v44 = vadd.f32 %v725_v39, %v320_v43 }
 0x1ee   :  { %v842_v45 = vpop.f32.mrf.mxu1 }
 0x1ef   :  { %v325_v47 = vmax.f32 %v321_v44, 0.0 }
 0x1f1   :  { %v326_v48 = vpack.c.bf16 %v325_v47, %v324_v46 }
 0x1f3   :  { %860 = vmatmul.mubr.bf16.vlgmr.msra.gmra.mxu0 %v326_v48 }
 0x1f4   :  { %899 = vmatprep.mubr.msk.bf16.mxu0 %vm1121_vm0, %v1120_v0  ;;  %884 = vmatpush3.bf16.msra.mxu0 %v944_v52 }
 0x1f5   :  { %885 = vmatprep.subr.bf16.mxu0 %v1120_v0 }
 0x1f8   :  { %886 = vmatpush3.bf16.msra.mxu0 %v945_v53 }
 0x1f9   :  { %887 = vmatprep.subr.bf16.mxu0 %v1120_v0 }
 0x1fc   :  { %888 = vmatpush3.bf16.msra.mxu0 %v946_v54 }
 0x1fd   :  { %889 = vmatprep.subr.bf16.mxu0 %v1120_v0 }
 0x200   :  { %890 = vmatpush3.bf16.msra.mxu0 %v947_v55 }
 0x201   :  { %891 = vmatprep.subr.bf16.mxu0 %v1120_v0 }
 0x204   :  { %892 = vmatpush3.bf16.msra.mxu0 %v948_v56 }
 0x205   :  { %893 = vmatprep.subr.bf16.mxu0 %v1120_v0 }
 0x208   :  { %894 = vmatpush3.bf16.msra.mxu0 %v949_v4 }
 0x209   :  { %895 = vmatprep.subr.bf16.mxu0 %v1120_v0 }
 0x20c   :  { %896 = vmatpush3.bf16.msra.mxu0 %v950_v5 }
 0x20d   :  { %897 = vmatprep.subr.bf16.mxu0 %v1120_v0  ;;  %v752_v0 = vld [vmem:[%s1293_s10] ss:$0 sm:$0xff]  ;;  %s704_s10 = sshll.u32 %s1122_s8, 4  ;;  %s705_s10 = int_to_ptr.vmem [resolvable:$true] %s704_s10 }
 0x20e   :  { %s1080_s15 = scalar_lea.vmem %s705_s10, 128  ;;  %p1085_p3 = scmp.lt.s32.totalorder %s705_s10, %s705_s10 }
 0x20f   :  { %p1081_p2 = scmp.ne.s32.totalorder %s705_s10, %s1080_s15  ;;  %p1086_p4 = scmp.lt.s32.totalorder %s1080_s15, %s1080_s15 }
 0x210   :  { %898 = vmatpush3.bf16.msra.mxu0 %v951_v6 }
 0x211   :  { %p1087_p5 = por %p1086_p4, %p1085_p3 }
 0x213   :  { %p1088_p6 = pnand %p1087_p5, %p1081_p2 }
 0x2b3   :  { %v432_v58 = vpop.f32.mrf.mxu0 }
 0x2b4   :  { %v433_v60 = vadd.f32 %v734_v57, %v432_v58 }
 0x2b5   :  { %v861_v59 = vpop.f32.mrf.mxu0 }
 0x2b6   :  { %v439_v1 = vmax.f32 %v433_v60, 0.0 }
 0x2b7   :  { %v435_v61 = vpop.f32.mrf.mxu0 }
 0x2b8   :  { %v436_v62 = vadd.f32 %v734_v57, %v435_v61 }
 0x2b9   :  { %v862_v63 = vpop.f32.mrf.mxu0 }
 0x2ba   :  { %v440_v2 = vmax.f32 %v436_v62, 0.0 }
 0x2bc   :  { %v441_v3 = vpack.c.bf16 %v440_v2, %v439_v1 }
 0x2be   :  { %880 = vmatmul.mubr.bf16.vlgmr.msra.gmra.mxu1 %v441_v3 }
 0x37e   :  { %v547_v8 = vpop.f32.mrf.mxu1 }
 0x37f   :  { %v548_v10 = vadd.f32 %v743_v7, %v547_v8 }
 0x380   :  { %v881_v9 = vpop.f32.mrf.mxu1 }
 0x381   :  { %v554_v14 = vmax.f32 %v548_v10, 0.0 }
 0x382   :  { %v550_v11 = vpop.f32.mrf.mxu1 }
 0x383   :  { %v551_v12 = vadd.f32 %v743_v7, %v550_v11 }
 0x384   :  { %v882_v13 = vpop.f32.mrf.mxu1 }
 0x385   :  { %v555_v15 = vmax.f32 %v551_v12, 0.0 }
 0x387   :  { %v556_v16 = vpack.c.bf16 %v555_v15, %v554_v14 }
 0x389   :  { %900 = vmatmul.mubr.bf16.vlgmr.msra.gmra.mxu0 %v556_v16 }
 0x449   :  { %v662_v17 = vpop.f32.mrf.mxu0 }
 0x44a   :  { %v663_v18 = vadd.f32 %v752_v0, %v662_v17 }
 0x44b   :  { %v901_v19 = vpop.f32.mrf.mxu0 }
 0x44c   :  { %669 = vmax.xlane.f32.xlu0 %v663_v18 }
 0x44d   :  { %v665_v20 = vpop.f32.mrf.mxu0 }
 0x44e   :  { %v666_v21 = vadd.f32 %v752_v0, %v665_v20 }
 0x44f   :  { %v902_v22 = vpop.f32.mrf.mxu0 }
 0x450   :  { %671 = vmax.xlane.f32.xlu0 %v666_v21 }
 0x4d5   :  { %v670_v23 = vpop.xlane.xlu0 %669 }
 0x4d6   :  { %v673_v24 = vsub.f32 %v663_v18, %v670_v23 }
 0x4d8   :  { %v675_v25 = vmul.f32 1.442695, %v673_v24 }
 0x4d9   :  { %v672_v26 = vpop.xlane.xlu0 %671 }
 0x4da   :  { %v674_v27 = vsub.f32 %v666_v21, %v672_v26  ;;  %952 = vpow2.f32 %v675_v25 }
 0x4dc   :  { %v677_v28 = vmul.f32 1.442695, %v674_v27 }
 0x4de   :  { %954 = vpow2.f32 %v677_v28 }
 0x4e7   :  { %v953_v29 = vpop.eup %952 }
 0x4e8   :  { %679 = vadd.xlane.f32.xlu1 %v953_v29 }
 0x4eb   :  { %v955_v30 = vpop.eup %954 }
 0x4ec   :  { %681 = vadd.xlane.f32.xlu1 %v955_v30 }
 0x571   :  { %v680_v31 = vpop.xlane.xlu1 %679 }
 0x572   :  { %956 = vlog2.f32 %v680_v31 }
 0x575   :  { %v682_v32 = vpop.xlane.xlu1 %681 }
 0x576   :  { %958 = vlog2.f32 %v682_v32 }
 0x57f   :  { %v957_v33 = vpop.eup %956 }
 0x580   :  { %v684_v34 = vmul.f32 0.6931472, %v957_v33 }
 0x582   :  { %v687_v38 = vsub.f32 %v673_v24, %v684_v34 }
 0x583   :  { %v959_v35 = vpop.eup %958 }
 0x584   :  { %v686_v36 = vmul.f32 0.6931472, %v959_v35 }
 0x586   :  { %v688_v37 = vsub.f32 %v674_v27, %v686_v36 }
 0x588   :  { %v768_v39 = vpack.c.bf16 %v688_v37, %v687_v38 }
 0x58a   :  { %769 = vst [vmem:[#allocation13] sm:$0xff] %v768_v39  }
 0x58b   :  { %1091 = shalt.err (!%p1088_p6)
}
 0x58c   :  { %710 = dma.vmem_to_hbm [thread:$0]  %s705_s10, 128, %s1294_s11, [#allocation4], %s1111_s20, %s1111_s20, %s1112_s21  }
 0x58d   :  { %1108 = dma.done.wait [#allocation4], 128  }
 0x58e   :  { %1109 = vsyncadd [#allocation4], 4294967168 }
 0x58f   :  { %714 = vsyncpa [#allocation3], 1 }
 0x590   :  { %715 = vsyncpa [#allocation6], 1 }
 0x591   :  { %716 = vsyncpa [#allocation9], 1 }
 0x592   :  { %717 = vsyncpa [#allocation12], 1 }
 0x593   :  { %718 = vsyncpa [#allocation4], 1 }

</bundles_post_ra>
